<compile_context>
chip_gen: v7x
topology: tpu7x:2x2x1
jax: 0.10.0
libtpu: 0.0.40
codegen_flags: <defaults>
</compile_context>

<pallas_src>
import functools

import jax
import jax.numpy as jnp
from jax import lax
from jax.experimental import pallas as pl
from jax.experimental.pallas import tpu as pltpu

EPS = 1e-5          # nn.LayerNorm default epsilon
_LANE = 128         # vreg lane width
_SUBLANE = 8        # vreg sublane count (f32)
_MAX_TB = 8192      # keep per-op vreg counts / compile time bounded


def _round_up(x, m):
    return ((x + m - 1) // m) * m


def _vmem_capacity_bytes():
    """Physical VMEM per core (128 MiB on v5e/v6e, 64 MiB on v7x)."""
    try:
        cap = getattr(pltpu.get_tpu_info(), "vmem_capacity_bytes", None)
        if cap:
            return int(cap)
    except Exception:
        pass
    return 64 * 1024 * 1024          # conservative fallback (v7x-sized)


def _num_tensorcores():
    """2 on megacore-style chips (v4 / v5p / v7x), 1 on v5e / v6e."""
    try:
        dev = jax.devices()[0]
        ncores = getattr(dev, "num_cores", None)
        if ncores:
            return int(ncores)
        kind = str(getattr(dev, "device_kind", "")).lower()
        if any(tag in kind for tag in ("v4", "v5p", "v7", "7x")):
            return 2
    except Exception:
        pass
    return 1


def _xyz_normal_kernel(x_ref, o_ref, *, d, num):
    """Block: (TB, D*NUM) -- batch rows on sublanes, features on lanes.

    Step 1: subtract the per-(batch, d) mean over NUM.
    Step 2: LayerNorm (eps=1e-5, no affine) over the flattened D*NUM features.
    All statistics are per batch row, so the ragged last block's undefined rows
    never contaminate valid rows (and their stores are masked by Pallas).
    """
    x = x_ref[...].astype(jnp.float32)                                # (TB, F)
    f = d * num

    # 0/1 segment-indicator matrices (feature -> its D row), built from iotas
    # using compares only (no integer division).  Trivial VPU work, fully hidden
    # under the HBM-bound DMA.
    fi = lax.broadcasted_iota(jnp.int32, (f, d), 0)
    ci = lax.broadcasted_iota(jnp.int32, (f, d), 1) * num
    s_fd = ((fi >= ci) & (fi < ci + num)).astype(jnp.float32)         # (F, D)
    fi_t = lax.broadcasted_iota(jnp.int32, (d, f), 1)
    ci_t = lax.broadcasted_iota(jnp.int32, (d, f), 0) * num
    s_df = ((fi_t >= ci_t) & (fi_t < ci_t + num)).astype(jnp.float32)  # (D, F)

    # Step 1: per-(batch, d) mean over NUM via tiny MXU matmuls (the MXU is idle
    # in this memory-bound kernel), then row-center.
    m = jnp.dot(x, s_fd, preferred_element_type=jnp.float32,
                precision=lax.Precision.HIGHEST) * (1.0 / num)        # (TB, D)
    xc = x - jnp.dot(m, s_df, preferred_element_type=jnp.float32,
                     precision=lax.Precision.HIGHEST)                 # (TB, F)

    # Step 2: after row-centering the flat mean is exactly 0, so LayerNorm only
    # needs the centered two-pass variance (numerically robust, no cancellation).
    var = jnp.sum(xc * xc, axis=-1, keepdims=True) * (1.0 / f)        # (TB, 1)
    inv = lax.rsqrt(var + EPS)

    o_ref[...] = (xc * inv).astype(o_ref.dtype)


def xyz_normal_pallas(x, max_block_b=None):
    """x: (B, D, NUM) -> (B, D, NUM), native layout in and out (no transposes)."""
    b, d, num = x.shape
    f = d * num
    itemsize = jnp.dtype(x.dtype).itemsize

    # ---- batch tile (TB) from a generation-aware VMEM budget -----------------
    vmem_cap = _vmem_capacity_bytes()
    row_pad_bytes = _round_up(f, _LANE) * itemsize   # VMEM rows pad to 128 lanes
    row_real_bytes = f * itemsize                    # actual HBM bytes per row
    # Input + output buffers, each double-buffered, take <= ~1/5 of VMEM; the rest
    # is headroom for compiler-managed f32 intermediates.
    io_budget = vmem_cap // 5
    tb_cap = max(_SUBLANE, io_budget // (4 * row_pad_bytes))
    tb_cap = min(_MAX_TB, max(_SUBLANE, (tb_cap // _SUBLANE) * _SUBLANE))
    if max_block_b is not None:
        tb_cap = min(tb_cap, max(_SUBLANE, _round_up(max_block_b, _SUBLANE)))
    tb = min(_round_up(b, _SUBLANE), tb_cap)

    # Split a single-tile batch across TensorCores only on 2-core chips, and only
    # when each half still moves >= ~1 MiB of real data; on v5e/v6e (single core)
    # a split would just double the per-step overhead.
    if (_num_tensorcores() >= 2 and tb >= b
            and b * row_real_bytes >= 2 * (1 << 20)):
        tb = min(tb, _round_up((b + 1) // 2, _SUBLANE))

    grid = (pl.cdiv(b, tb),)
    vmem_limit = int(min(vmem_cap, max(32 * 1024 * 1024, (vmem_cap * 3) // 4)))

    xf = x.reshape(b, f)     # free: merges contiguous trailing dims, no HBM pass

    out = pl.pallas_call(
        functools.partial(_xyz_normal_kernel, d=d, num=num),
        out_shape=jax.ShapeDtypeStruct((b, f), x.dtype),
        grid_spec=pltpu.PrefetchScalarGridSpec(
            num_scalar_prefetch=0,
            grid=grid,
            in_specs=[pl.BlockSpec((tb, f), lambda i: (i, 0))],
            out_specs=pl.BlockSpec((tb, f), lambda i: (i, 0)),
        ),
        compiler_params=pltpu.CompilerParams(
            dimension_semantics=("parallel",),
            vmem_limit_bytes=vmem_limit,
        ),
    )(xf)

    return out.reshape(b, d, num)   # free reshape back to the native layout


def xyz_normal_ref(x):
    """Pure-JAX reference mirroring the PyTorch normalization."""
    b, d, num = x.shape
    xc = x - jnp.mean(x, axis=-1, keepdims=True)
    flat = xc.reshape(b, -1)
    mu = jnp.mean(flat, axis=-1, keepdims=True)
    var = jnp.mean((flat - mu) ** 2, axis=-1, keepdims=True)
    out = (flat - mu) / jnp.sqrt(var + EPS)
    return out.reshape(b, d, num)


# TODO(synk): the remaining BackboneFeature stages (farthest_point_sample / knn
# top-k + the data-dependent index_points gathers, and the Conv1d+BatchNorm
# residual MLP stacks with learned weights, plus any learned affine applied after
# this normalization) are data-dependent / weight-bearing and are left to XLA;
# this kernel covers the point-normalization core only.

if __name__ == "__main__":
    B, D, NUM = 2, 3, 16
    key = jax.random.PRNGKey(0)
    x = jax.random.normal(key, (B, D, NUM), dtype=jnp.float32)

    out = xyz_normal_pallas(x)
    jax.block_until_ready(out)
    ref = xyz_normal_ref(x)
    assert out.shape == (B, D, NUM)
    assert jnp.allclose(out, ref, atol=1e-5, rtol=1e-5), "mismatch vs reference"

    # Multi-block grid with a ragged last block (320 = 2*128 + 64 rows).
    x2 = jax.random.normal(jax.random.PRNGKey(0), (320, D, NUM), dtype=jnp.float32)
    ref2 = xyz_normal_ref(x2)
    out2 = xyz_normal_pallas(x2, max_block_b=128)
    jax.block_until_ready(out2)
    assert jnp.allclose(out2, ref2, atol=1e-5, rtol=1e-5), "mismatch (ragged multi-block)"

    # Default (large single-tile) path on the same batch.
    out3 = xyz_normal_pallas(x2)
    jax.block_until_ready(out3)
    assert jnp.allclose(out3, ref2, atol=1e-5, rtol=1e-5), "mismatch (large tile)"

    print("KERNEL_OK")
</pallas_src>

<mosaic_0001>
module attributes {stable_mosaic.version = 11 : i64} {
  func.func @_xyz_normal_kernel(%arg0: i32, %arg1: memref<8x48xf32, #tpu.memory_space<vmem>>, %arg2: memref<8x48xf32, #tpu.memory_space<vmem>>) attributes {dimension_semantics = [#tpu.dimension_semantics<parallel>], iteration_bounds = array<i64: 1>, scalar_prefetch = 0 : i64, scratch_operands = 0 : i64, tpu.core_type = #tpu.core_type<tc>, window_params = [{transform_indices = @transform_0, window_bounds = array<i64: 8, 48>}, {transform_indices = @transform_1, window_bounds = array<i64: 8, 48>}]} {
    %c0 = arith.constant 0 : index
    %c0_0 = arith.constant 0 : index
    %0 = vector.load %arg1[%c0, %c0_0] : memref<8x48xf32, #tpu.memory_space<vmem>>, vector<8x48xf32>
    %1 = tpu.iota {dimensions = array<i32: 0>} : vector<48x3xi32>
    %2 = tpu.iota {dimensions = array<i32: 1>} : vector<48x3xi32>
    %c16_i32 = arith.constant 16 : i32
    %3 = vector.broadcast %c16_i32 : i32 to vector<48x3xi32>
    %4 = arith.muli %2, %3 : vector<48x3xi32>
    %5 = arith.cmpi sge, %1, %4 : vector<48x3xi32>
    %c16_i32_1 = arith.constant 16 : i32
    %6 = vector.broadcast %c16_i32_1 : i32 to vector<48x3xi32>
    %7 = arith.addi %4, %6 : vector<48x3xi32>
    %8 = arith.cmpi slt, %1, %7 : vector<48x3xi32>
    %9 = arith.andi %5, %8 : vector<48x3xi1>
    %10 = arith.extui %9 : vector<48x3xi1> to vector<48x3xi32>
    %11 = arith.sitofp %10 : vector<48x3xi32> to vector<48x3xf32>
    %12 = tpu.iota {dimensions = array<i32: 1>} : vector<3x48xi32>
    %13 = tpu.iota {dimensions = array<i32: 0>} : vector<3x48xi32>
    %c16_i32_2 = arith.constant 16 : i32
    %14 = vector.broadcast %c16_i32_2 : i32 to vector<3x48xi32>
    %15 = arith.muli %13, %14 : vector<3x48xi32>
    %16 = arith.cmpi sge, %12, %15 : vector<3x48xi32>
    %c16_i32_3 = arith.constant 16 : i32
    %17 = vector.broadcast %c16_i32_3 : i32 to vector<3x48xi32>
    %18 = arith.addi %15, %17 : vector<3x48xi32>
    %19 = arith.cmpi slt, %12, %18 : vector<3x48xi32>
    %20 = arith.andi %16, %19 : vector<3x48xi1>
    %21 = arith.extui %20 : vector<3x48xi1> to vector<3x48xi32>
    %22 = arith.sitofp %21 : vector<3x48xi32> to vector<3x48xf32>
    %cst = arith.constant dense<0.000000e+00> : vector<8x3xf32>
    %23 = tpu.matmul %0, %11, %cst {dimension_numbers = #tpu.dot_dimension_numbers<[1], [0], [0], [1], [0, 0, 1, 1], [], []>, precision = #tpu.contract_precision<fp32>} : vector<8x48xf32>, vector<48x3xf32>, vector<8x3xf32> -> vector<8x3xf32>
    %cst_4 = arith.constant 6.250000e-02 : f32
    %24 = vector.broadcast %cst_4 : f32 to vector<8x3xf32>
    %25 = arith.mulf %23, %24 : vector<8x3xf32>
    %cst_5 = arith.constant dense<0.000000e+00> : vector<8x48xf32>
    %26 = tpu.matmul %25, %22, %cst_5 {dimension_numbers = #tpu.dot_dimension_numbers<[1], [0], [0], [1], [0, 0, 1, 1], [], []>, precision = #tpu.contract_precision<fp32>} : vector<8x3xf32>, vector<3x48xf32>, vector<8x48xf32> -> vector<8x48xf32>
    %27 = arith.subf %0, %26 : vector<8x48xf32>
    %28 = arith.mulf %27, %27 : vector<8x48xf32>
    %cst_6 = arith.constant dense<0.000000e+00> : vector<8xf32>
    %29 = vector.multi_reduction <add>, %28, %cst_6 [1] : vector<8x48xf32> to vector<8xf32>
    %30 = vector.shape_cast %29 : vector<8xf32> to vector<8x1xf32>
    %cst_7 = arith.constant 0.020833334 : f32
    %31 = vector.broadcast %cst_7 : f32 to vector<8x1xf32>
    %32 = arith.mulf %30, %31 : vector<8x1xf32>
    %cst_8 = arith.constant 9.99999974E-6 : f32
    %33 = vector.broadcast %cst_8 : f32 to vector<8x1xf32>
    %34 = arith.addf %32, %33 : vector<8x1xf32>
    %35 = math.rsqrt %34 : vector<8x1xf32>
    %36 = vector.broadcast %35 : vector<8x1xf32> to vector<8x48xf32>
    %37 = arith.mulf %27, %36 : vector<8x48xf32>
    %c0_9 = arith.constant 0 : index
    %c0_10 = arith.constant 0 : index
    %38 = vector.load %arg2[%c0_9, %c0_10] : memref<8x48xf32, #tpu.memory_space<vmem>>, vector<8x48xf32>
    tpu.vector_store %arg2[%c0_9, %c0_10], %37 {strides = array<i32>} : memref<8x48xf32, #tpu.memory_space<vmem>>, vector<8x48xf32>,
    return
  }
  func.func @transform_0(%arg0: i32) -> (i32, i32) {
    %c0_i32 = arith.constant 0 : i32
    %c0_i32_0 = arith.constant 0 : i32
    return %arg0, %c0_i32 : i32, i32
  }
  func.func @transform_1(%arg0: i32) -> (i32, i32) {
    %c0_i32 = arith.constant 0 : i32
    %c0_i32_0 = arith.constant 0 : i32
    return %arg0, %c0_i32 : i32, i32
  }
}

</mosaic_0001>

<bundles_post_ra>
// kernel: tpu_custom_call.1
= control target key start
LH: loop header
LB: loop body
LE: loop exit
PB: predicated region body
PF: predicated region fallthrough
CT: control target
= control target key end

     0   :  { %6 = vsyncpa [#allocation3], 0  ;;  %s1658_s0 = inlined_call_operand.hbm [shape: f32[2,48], index: 0, kind: input, shape index: {}]   ;;  %s1659_s1 = inlined_call_operand.hbm [shape: f32[2,48], index: 1, kind: output, shape index: {}]  }
   0x1   :  { %7 = vsyncpa [#allocation4], 0 }
   0x2   :  { %12 = vsyncadd [#allocation3], 96  ;;  %s1402_s6 = smov [#allocation2]   ;;  %s1354_s10 = scalar_lea.hbm %s1658_s0, 32 }
   0x3   :  { %s13_s7 = sshll.u32 %s1402_s6, 4  ;;  %p1355_p0 = scmp.ne.s32.totalorder %s1658_s0, %s1354_s10  ;;  %s14_s7 = int_to_ptr.vmem [resolvable:$true] %s13_s7 }
   0x4   :  { %p1358_p1 = scmp.lt.u32.totalorder %s1354_s10, %s1658_s0 }
   0x6   :  { %p1360_p2 = pnand %p1358_p1, %p1355_p0 }
   0x8   :  { %1363 = shalt.err (!%p1360_p2)
}
   0x9   :  { %s1364_s15 = scalar_lea.vmem %s14_s7, 32  ;;  %s1368_s16 = scalar_lea.vmem %s14_s7, 128 }
   0xa   :  { %p1365_p3 = scmp.ne.s32.totalorder %s14_s7, %s1364_s15  ;;  %p1369_p4 = scmp.lt.s32.totalorder %s14_s7, %s14_s7 }
   0xb   :  { %p1370_p5 = scmp.lt.s32.totalorder %s1368_s16, %s1364_s15 }
   0xd   :  { %p1371_p6 = por %p1370_p5, %p1369_p4 }
   0xf   :  { %p1372_p7 = pnand %p1371_p6, %p1365_p3 }
  0x11   :  { %1375 = shalt.err (!%p1372_p7)
}
  0x12   :  { %s1403_s17 = smov 32   ;;  %s1404_s18 = smov 2  }
  0x13   :  { %19 = dma.hbm_to_vmem [thread:$0]  %s1658_s0, 32, %s14_s7, [#allocation3], %s1403_s17, %s1403_s17, %s1404_s18  }
  0x14   :  { %1398 = dma.done.wait [#allocation3], 128  }
  0x15   :  { %1399 = vsyncadd [#allocation3], 4294967168  ;;  %v24_v0 = vlaneseq  ;;  %v1405_v1 = vmov 0.0|0.0   ;;  %vm1406_vm0 = vmmov 0   ;;  %v1407_v4 = vmov 0.0   ;;  %v1452_v12 = vld [vmem:[#allocation2] sm:$0xff] }
  0x16   :  { %1289 = vmatprep.subr.bf16.mxu0 %v1405_v1  ;;  %1271 = vmatprep.subr.bf16.mxu1 %v1405_v1  ;;  %vm72_vm2 = vcmask 392192   ;;  %v1408_v41 = vmov 1.0|1.0  }
  0x17   :  { %v1437_v2 = vshrl.u32 %v24_v0, 7  ;;  %v1439_v3 = vand.u32 127, %v24_v0  ;;  %1193 = vmatprep.mubr.msk.f32.mxu0 %vm1406_vm0, %v1407_v4  ;;  %1163 = vmatprep.mubr.msk.f32.mxu1 %vm1406_vm0, %v1407_v4  ;;  %v74_v14 = vsel %vm72_vm2, %v1452_v12, 0 }
  0x18   :  { %v1468_v17 = vand.u32 4294901760, %v74_v14 }
  0x19   :  { %v26_v5 = vadd.s32 8, %v1437_v2  ;;  %v33_v6 = vmul.u32 16, %v1439_v3  ;;  %v27_v7 = vadd.s32 16, %v1437_v2  ;;  %v28_v8 = vadd.s32 24, %v1437_v2 }
  0x1a   :  { %v29_v10 = vadd.s32 32, %v1437_v2  ;;  %v30_v11 = vadd.s32 40, %v1437_v2  ;;  %v1499_v28 = vsub.f32 %v74_v14, %v1468_v17 }
  0x1b   :  { %vm34_vm1 = vcmp.ge.s32.totalorder %v1437_v2, %v33_v6  ;;  %v40_v9 = vadd.s32 16, %v33_v6  ;;  %vm35_vm3 = vcmp.ge.s32.totalorder %v26_v5, %v33_v6  ;;  %vm36_vm6 = vcmp.ge.s32.totalorder %v27_v7, %v33_v6 }
  0x1c   :  { %vm37_vm9 = vcmp.ge.s32.totalorder %v28_v8, %v33_v6  ;;  %vm38_vm12 = vcmp.ge.s32.totalorder %v29_v10, %v33_v6  ;;  %vm39_vm15 = vcmp.ge.s32.totalorder %v30_v11, %v33_v6  ;;  %v149_v37 = vand.u32 4294901760, %v1499_v28 }
  0x1d   :  { %vm41_vm4 = vcmp.lt.s32.totalorder %v1437_v2, %v40_v9  ;;  %vm42_vm5 = vcmp.lt.s32.totalorder %v26_v5, %v40_v9  ;;  %vm43_vm7 = vcmp.lt.s32.totalorder %v27_v7, %v40_v9  ;;  %vm44_vm10 = vcmp.lt.s32.totalorder %v28_v8, %v40_v9 }
  0x1e   :  { %vm1455_vm8 = vmand %vm34_vm1, %vm41_vm4  ;;  %vm45_vm13 = vcmp.lt.s32.totalorder %v29_v10, %v40_v9  ;;  %vm46_vm1 = vcmp.lt.s32.totalorder %v30_v11, %v40_v9  ;;  %v150_v46 = vsub.f32 %v1499_v28, %v149_v37  ;;  %v65_v8 = vmul.u32 16, %v1437_v2 }
  0x1f   :  { %vm1461_vm11 = vmand %vm35_vm3, %vm42_vm5  ;;  %v1069_v16 = vsel %vm1455_vm8, 1.0, %v1407_v4 }
  0x20   :  { %v1070_v18 = vsel %vm1461_vm11, 1.0, %v1407_v4  ;;  %v1473_v19 = vsub.f32 %v1069_v16, %v1069_v16  ;;  %vm1475_vm14 = vmand %vm36_vm6, %vm43_vm7  ;;  %v151_v55 = vand.u32 4294901760, %v150_v46  ;;  %v67_v9 = vadd.s32 16, %v65_v8 }
  0x21   :  { %v1479_v21 = vsub.f32 %v1070_v18, %v1070_v18  ;;  %vm1481_vm3 = vmand %vm37_vm9, %vm44_vm10  ;;  %v1071_v23 = vsel %vm1475_vm14, 1.0, %v1407_v4  ;;  %vm66_vm9 = vcmp.ge.s32.totalorder %v1439_v3, %v65_v8 }
  0x22   :  { %v160_v24 = vand.u32 4294901760, %v1473_v19  ;;  %v1072_v25 = vsel %vm1481_vm3, 1.0, %v1407_v4  ;;  %v1492_v26 = vsub.f32 %v1071_v23, %v1071_v23  ;;  %vm1494_vm4 = vmand %vm38_vm12, %vm45_vm13  ;;  %vm68_vm10 = vcmp.lt.s32.totalorder %v1439_v3, %v67_v9 }
  0x23   :  { %v167_v29 = vand.u32 4294901760, %v1479_v21  ;;  %v1290_v30 = vpack.c.bf16 %v1479_v21, %v1473_v19  ;;  %v1504_v31 = vsub.f32 %v1072_v25, %v1072_v25  ;;  %vm1506_vm5 = vmand %vm39_vm15, %vm46_vm1  ;;  %v1073_v33 = vsel %vm1494_vm4, 1.0, %v1407_v4 }
  0x24   :  { %v1074_v34 = vsel %vm1506_vm5, 1.0, %v1407_v4  ;;  %v1516_v35 = vsub.f32 %v1073_v33, %v1073_v33  ;;  %vm1522_vm6 = vmpackc.low %vm1461_vm11, %vm1455_vm8  ;;  %v161_v38 = vsub.f32 %v1473_v19, %v160_v24  ;;  %v174_v44 = vand.u32 4294901760, %v1492_v26 }
  0x25   :  { %1291 = vmatpush3.bf16.msra.mxu0 %v1290_v30  ;;  %v1293_v39 = vpack.c.bf16 %v1504_v31, %v1492_v26  ;;  %v194_v40 = vsub.f32 %v1074_v34, %v1074_v34  ;;  %1273 = vmatpush3.bf16.msk.msra.mxu1 %vm1522_vm6, %v1408_v41  ;;  %v168_v42 = vsub.f32 %v1479_v21, %v167_v29  ;;  %vm1542_vm7 = vmpackc.low %vm1481_vm3, %vm1475_vm14  ;;  %v181_v45 = vand.u32 4294901760, %v1504_v31 }
  0x26   :  { %1292 = vmatprep.subr.bf16.mxu0 %v1405_v1  ;;  %1274 = vmatprep.subr.bf16.mxu1 %v1405_v1  ;;  %v162_v48 = vand.u32 4294901760, %v161_v38  ;;  %vm1559_vm8 = vmpackc.low %vm1506_vm5, %vm1494_vm4  ;;  %v175_v51 = vsub.f32 %v1492_v26, %v174_v44  ;;  %v188_v53 = vand.u32 4294901760, %v1516_v35  ;;  %v1308_v5 = vpack.c.bf16 %v167_v29, %v160_v24 }
  0x27   :  { %v1296_v47 = vpack.c.bf16 %v194_v40, %v1516_v35  ;;  %v169_v49 = vand.u32 4294901760, %v168_v42  ;;  %v182_v52 = vsub.f32 %v1504_v31, %v181_v45  ;;  %v195_v54 = vand.u32 4294901760, %v194_v40  ;;  %vm69_vm12 = vmand %vm66_vm9, %vm68_vm10 }
  0x28   :  { %v176_v57 = vand.u32 4294901760, %v175_v51  ;;  %v189_v59 = vsub.f32 %v1516_v35, %v188_v53  ;;  %v1311_v6 = vpack.c.bf16 %v181_v45, %v174_v44  ;;  %vm592_vm11 = vcmask 1042432  }
  0x29   :  { %1294 = vmatpush3.bf16.msra.mxu0 %v1293_v39  ;;  %1276 = vmatpush3.bf16.msk.msra.mxu1 %vm1542_vm7, %v1408_v41  ;;  %v1281_v56 = vpack.c.bf16 %v169_v49, %v162_v48  ;;  %v183_v58 = vand.u32 4294901760, %v182_v52  ;;  %v196_v60 = vsub.f32 %v194_v40, %v195_v54  ;;  %v1314_v7 = vpack.c.bf16 %v195_v54, %v188_v53 }
  0x2a   :  { %1295 = vmatprep.subr.bf16.mxu0 %v1405_v1  ;;  %1277 = vmatprep.subr.bf16.mxu1 %v1405_v1  ;;  %v190_v62 = vand.u32 4294901760, %v189_v59  ;;  %v1075_v10 = vsel %vm69_vm12, 1.0, %v1407_v4  ;;  %vm588_vm13 = vcmask 23552  }
  0x2b   :  { %v1284_v61 = vpack.c.bf16 %v183_v58, %v176_v57  ;;  %v197_v63 = vand.u32 4294901760, %v196_v60  ;;  %v594_v13 = vsel %vm592_vm11, %v1075_v10, 0 }
  0x2c   :  { %v674_v16 = vsub.f32 %v594_v13, %v594_v13 }
  0x2d   :  { %1297 = vmatpush3.bf16.msra.mxu0 %v1296_v47  ;;  %1279 = vmatpush3.bf16.msk.msra.mxu1 %vm1559_vm8, %v1408_v41  ;;  %v1287_v0 = vpack.c.bf16 %v197_v63, %v190_v62 }
  0x2e   :  { %1298 = vmatprep.subr.bf16.mxu0 %v1405_v1  ;;  %1280 = vmatprep.subr.bf16.mxu1 %v1405_v1  ;;  %v675_v3 = vand.u32 4294901760, %v674_v16 }
  0x30   :  { %1194 = vmatmul.mubr.f32.vlgmr.msra.gmra.mrb[0].mxu0 %v1499_v28  ;;  %1164 = vmatmul.mubr.f32.vlgmr.msra.gmra.mrb[0].mxu1 %v151_v55  ;;  %v676_v21 = vsub.f32 %v674_v16, %v675_v3 }
  0x31   :  { %1300 = vmatpush3.bf16.msk.msra.mxu0 %vm1522_vm6, %v1408_v41  ;;  %1208 = vmatprep.mubr.msk.f32.mxu0 %vm1406_vm0, %v1407_v4 }
  0x32   :  { %1301 = vmatprep.subr.bf16.mxu0 %v1405_v1  ;;  %1282 = vmatpush3.bf16.msra.mxu1 %v1281_v56  ;;  %v677_v24 = vand.u32 4294901760, %v676_v21 }
  0x33   :  { %1283 = vmatprep.subr.bf16.mxu1 %v1405_v1  ;;  %1178 = vmatprep.mubr.msk.f32.mxu1 %vm1406_vm0, %v1407_v4 }
  0x35   :  { %1303 = vmatpush3.bf16.msk.msra.mxu0 %vm1542_vm7, %v1408_v41 }
  0x36   :  { %1304 = vmatprep.subr.bf16.mxu0 %v1405_v1  ;;  %1285 = vmatpush3.bf16.msra.mxu1 %v1284_v61 }
  0x37   :  { %1286 = vmatprep.subr.bf16.mxu1 %v1405_v1 }
  0x39   :  { %1306 = vmatpush3.bf16.msk.msra.mxu0 %vm1559_vm8, %v1408_v41 }
  0x3a   :  { %1307 = vmatprep.subr.bf16.mxu0 %v1405_v1  ;;  %1288 = vmatpush3.bf16.msra.mxu1 %v1287_v0 }
  0x3b   :  { %1241 = vmatprep.subr.mxu1 %v1407_v4 }
  0x3c   :  { %1209 = vmatmul.mubr.f32.vlgmr.msra.gmra.mrb[0].mxu0 %v149_v37 }
  0x3d   :  { %1309 = vmatpush3.bf16.msra.mxu0 %v1308_v5  ;;  %1179 = vmatmul.mubr.f32.vlgmr.msra.gmra.mrb[0].mxu1 %v1468_v17 }
  0x3e   :  { %1310 = vmatprep.subr.bf16.mxu0 %v1405_v1  ;;  %1223 = vmatprep.mubr.msk.f32.mxu0 %vm1406_vm0, %v1407_v4 }
  0x3f   :  { %1243 = vmatprep.mubr.msk.f32.mxu1 %vm1406_vm0, %v1407_v4  ;;  %1242 = vmatpush3.msk.msra.mxu1 %vm592_vm11, %v1075_v10 }
  0x40   :  { %1246 = vmatprep.subr.mxu1 %v1407_v4 }
  0x41   :  { %1312 = vmatpush3.bf16.msra.mxu0 %v1311_v6 }
  0x42   :  { %1313 = vmatprep.subr.bf16.mxu0 %v1405_v1 }
  0x45   :  { %1315 = vmatpush3.bf16.msra.mxu0 %v1314_v7 }
  0x46   :  { %1316 = vmatprep.subr.bf16.mxu0 %v1405_v1 }
  0x48   :  { %1224 = vmatmul.mubr.f32.vlgmr.msra.gmra.mrb[0].mxu0 %v1468_v17 }
  0x49   :  { %1318 = vmatpush3.bf16.msk.msra.mxu0 %vm1522_vm6, %v1408_v41  ;;  %1238 = vmatprep.mubr.msk.f32.mxu0 %vm1406_vm0, %v1407_v4 }
  0x4a   :  { %1319 = vmatprep.subr.bf16.mxu0 %v1405_v1 }
  0x4d   :  { %1321 = vmatpush3.bf16.msk.msra.mxu0 %vm1542_vm7, %v1408_v41 }
  0x4e   :  { %1322 = vmatprep.subr.bf16.mxu0 %v1405_v1 }
  0x51   :  { %1324 = vmatpush3.bf16.msk.msra.mxu0 %vm1559_vm8, %v1408_v41 }
  0x54   :  { %1239 = vmatmul.mubr.f32.vlgmr.msra.gmra.mrb[0].mxu0 %v1468_v17 }
 0x110   :  { %v254_v1 = vpop.f32.mrb[0].mxu1 }
 0x111   :  { %v1180_v11 = vpop.f32.mrb[1].mxu1 }
 0x127   :  { %v583_v14 = vpop.f32.mrb[0].mxu0 }
 0x128   :  { %v1325_v15 = vadd.f32 %v583_v14, %v254_v1  ;;  %v1240_v2 = vpop.f32.mrb[1].mxu0 }
 0x12a   :  { %v587_v17 = vmul.f32 0.0625, %v1325_v15 }
 0x12c   :  { %v590_v18 = vsel %vm588_vm13, %v587_v17, 0 }
 0x12d   :  { %v662_v19 = vand.u32 4294901760, %v590_v18 }
 0x12f   :  { %v663_v20 = vsub.f32 %v590_v18, %v662_v19 }
 0x131   :  { %v664_v22 = vand.u32 4294901760, %v663_v20 }
 0x133   :  { %v665_v23 = vsub.f32 %v663_v20, %v664_v22 }
 0x135   :  { %v666_v25 = vand.u32 4294901760, %v665_v23 }
 0x137   :  { %1244 = vmatmul.mubr.f32.vlgmr.msra.gmra.mrb[2].mxu1 %v666_v25 }
 0x138   :  { %1247 = vmatpush3.msra.mxu1 %v677_v24  ;;  %1248 = vmatprep.mubr.msk.f32.mxu1 %vm1406_vm0, %v1407_v4 }
 0x139   :  { %1251 = vmatprep.subr.mxu1 %v1407_v4 }
 0x13f   :  { %1249 = vmatmul.mubr.f32.vlgmr.msra.gmra.mrb[2].mxu1 %v662_v19 }
 0x140   :  { %1252 = vmatpush3.msra.mxu1 %v674_v16  ;;  %1253 = vmatprep.mubr.msk.f32.mxu1 %vm1406_vm0, %v1407_v4 }
 0x141   :  { %1256 = vmatprep.subr.mxu1 %v1407_v4 }
 0x147   :  { %1254 = vmatmul.mubr.f32.vlgmr.msra.gmra.mrb[2].mxu1 %v663_v20 }
 0x148   :  { %1257 = vmatpush3.msk.msra.mxu1 %vm592_vm11, %v1075_v10  ;;  %1258 = vmatprep.mubr.msk.f32.mxu1 %vm1406_vm0, %v1407_v4 }
 0x149   :  { %1261 = vmatprep.subr.mxu1 %v1407_v4 }
 0x14f   :  { %1259 = vmatmul.mubr.f32.vlgmr.msra.gmra.mrb[2].mxu1 %v664_v22 }
 0x150   :  { %1262 = vmatpush3.msra.mxu1 %v675_v3  ;;  %1263 = vmatprep.mubr.msk.f32.mxu1 %vm1406_vm0, %v1407_v4 }
 0x151   :  { %1266 = vmatprep.subr.mxu1 %v1407_v4 }
 0x157   :  { %1264 = vmatmul.mubr.f32.vlgmr.msra.gmra.mrb[2].mxu1 %v662_v19 }
 0x158   :  { %1267 = vmatpush3.msk.msra.mxu1 %vm592_vm11, %v1075_v10  ;;  %1268 = vmatprep.mubr.msk.f32.mxu1 %vm1406_vm0, %v1407_v4 }
 0x15f   :  { %1269 = vmatmul.mubr.f32.vlgmr.msra.gmra.mrb[2].mxu1 %v662_v19 }
 0x232   :  { %v1038_v26 = vpop.f32.mrb[2].mxu1 }
 0x233   :  { %v1042_v27 = vsub.f32 %v1452_v12, %v1038_v26  ;;  %v1270_v28 = vpop.f32.mrb[3].mxu1 }
 0x235   :  { %v1043_v29 = vmul.f32 %v1042_v27, %v1042_v27 }
 0x237   :  { %v1044_v30 = vsel %vm72_vm2, %v1043_v29, 0.0 }
 0x238   :  { %1045 = vadd.xlane.f32.xlu0 %v1044_v30 }
 0x2c5   :  { %v1046_v31 = vpop.xlane.xlu0 %1045 }
 0x2c6   :  { %v1047_v32 = vmul.f32 0.020833334, %v1046_v31 }
 0x2c8   :  { %v1048_v33 = vadd.f32 1e-05, %v1047_v32 }
 0x2ca   :  { %1352 = vrsqrt.f32 %v1048_v33 }
 0x2d4   :  { %v1353_v34 = vpop.eup %1352 }
 0x2d5   :  { %v1050_v35 = vmul.f32 %v1353_v34, %v1042_v27 }
 0x2d7   :  { %1051 = vst.msk [vmem:[#allocation5] sm:$0xff] %vm72_vm2, %v1050_v35 }
 0x2d8   :  { %1056 = vsyncadd [#allocation4], 96  ;;  %s1409_s0 = smov [#allocation5]  }
 0x2d9   :  { %s1057_s21 = sshll.u32 %s1409_s0, 4  ;;  %s1058_s21 = int_to_ptr.vmem [resolvable:$true] %s1057_s21 }
 0x2da   :  { %s1376_s22 = scalar_lea.vmem %s1058_s21, 32  ;;  %s1380_s23 = scalar_lea.vmem %s1058_s21, 128 }
 0x2db   :  { %p1377_p8 = scmp.ne.s32.totalorder %s1058_s21, %s1376_s22  ;;  %p1381_p9 = scmp.lt.s32.totalorder %s1058_s21, %s1058_s21 }
 0x2dc   :  { %p1382_p10 = scmp.lt.s32.totalorder %s1380_s23, %s1376_s22 }
 0x2de   :  { %p1383_p11 = por %p1382_p10, %p1381_p9 }
 0x2e0   :  { %p1384_p12 = pnand %p1383_p11, %p1377_p8 }
 0x2e2   :  { %1387 = shalt.err (!%p1384_p12)
}
 0x2e3   :  { %s1388_s26 = scalar_lea.hbm %s1659_s1, 32 }
 0x2e4   :  { %p1389_p13 = scmp.ne.s32.totalorder %s1659_s1, %s1388_s26  ;;  %p1392_p0 = scmp.lt.u32.totalorder %s1388_s26, %s1659_s1 }
 0x2e6   :  { %p1394_p1 = pnand %p1392_p0, %p1389_p13 }
 0x2e8   :  { %1397 = shalt.err (!%p1394_p1)
}
 0x2e9   :  { %1063 = dma.vmem_to_hbm [thread:$0]  %s1058_s21, 32, %s1659_s1, [#allocation4], %s1403_s17, %s1403_s17, %s1404_s18  }
 0x2ea   :  { %1400 = dma.done.wait [#allocation4], 128  }
 0x2eb   :  { %1401 = vsyncadd [#allocation4], 4294967168 }
 0x2ec   :  { %1067 = vsyncpa [#allocation3], 1 }
 0x2ed   :  { %1068 = vsyncpa [#allocation4], 1 }

</bundles_post_ra>
